<compile_context>
chip_gen: v7x
topology: tpu7x:2x2x1
jax: 0.10.0
libtpu: 0.0.40
codegen_flags: <defaults>
</compile_context>

<pallas_src>
import jax
import jax.numpy as jnp
from jax.experimental import pallas as pl
from jax.experimental.pallas import tpu as pltpu

BN_EPS = 1e-5


def _round_up(n, m):
    return ((n + m - 1) // m) * m


def attention_nn_kernel(
    gamma_ref, b3_ref,            # SMEM scalars
    x_ref,                        # (TILE_B, D)   VMEM, tiled over batch
    wv_ref, bv_ref,               # value linear  (D, D), (1, D)
    w1_ref, b1_ref,               # fc1 with BN1 folded: (D, H1), (1, H1)
    w2_ref, b2_ref,               # fc2 with BN2 folded: (H1, H2), (1, H2)
    w3_ref,                       # fc3 weight as a row: (1, H2)
    o_ref,                        # (TILE_B, 1)
):
    x = x_ref[...]                                               # (TB, D)

    # ---- SelfAttention (softmax over length-1 axis == 1.0) ----
    v = jnp.dot(x, wv_ref[...], preferred_element_type=jnp.float32) + bv_ref[...]
    att = gamma_ref[0] * v + x                                   # (TB, D)

    # ---- fc1 (+ folded BN1) -> ReLU ;  dropout1 = identity (eval) ----
    h1 = jnp.dot(att, w1_ref[...], preferred_element_type=jnp.float32) + b1_ref[...]
    h1 = jnp.maximum(h1, 0.0)

    # ---- fc2 (+ folded BN2) -> ReLU ;  dropout2 = identity (eval) ----
    h2 = jnp.dot(h1, w2_ref[...], preferred_element_type=jnp.float32) + b2_ref[...]
    h2 = jnp.maximum(h2, 0.0)

    # ---- fc3 (N=1: keep it off the MXU — VPU multiply + lane reduce) ----
    h3 = jnp.sum(h2 * w3_ref[...], axis=-1, keepdims=True) + b3_ref[0]
    o_ref[...] = jax.nn.sigmoid(h3)                              # (TB, 1)


def attention_nn_forward(x, kp, *, tile_b=None):
    """x: (B, D) float32; kp: output of prepare_params()."""
    B, D = x.shape
    H1 = kp["w1f"].shape[1]
    H2 = kp["w2f"].shape[1]

    if tile_b is None:
        # Multiple of 8 sublanes; 1024 rows keeps the working set
        # (x/att/h1/h2 intermediates + resident weights, double-buffered)
        # well under v7x's 64 MiB VMEM at these layer widths.
        tile_b = 1024 if B >= 1024 else _round_up(B, 8)

    B_pad = _round_up(B, tile_b)
    if B_pad != B:
        x = jnp.pad(x, ((0, B_pad - B), (0, 0)))

    grid = (B_pad // tile_b,)

    out = pl.pallas_call(
        attention_nn_kernel,
        out_shape=jax.ShapeDtypeStruct((B_pad, 1), jnp.float32),
        grid=grid,
        in_specs=[
            pl.BlockSpec(memory_space=pltpu.MemorySpace.SMEM),      # gamma
            pl.BlockSpec(memory_space=pltpu.MemorySpace.SMEM),      # b3
            pl.BlockSpec((tile_b, D), lambda i: (i, 0)),            # x tile
            pl.BlockSpec((D, D),   lambda i: (0, 0)),               # wv (resident)
            pl.BlockSpec((1, D),   lambda i: (0, 0)),               # bv
            pl.BlockSpec((D, H1),  lambda i: (0, 0)),               # w1 (BN folded)
            pl.BlockSpec((1, H1),  lambda i: (0, 0)),               # b1
            pl.BlockSpec((H1, H2), lambda i: (0, 0)),               # w2 (BN folded)
            pl.BlockSpec((1, H2),  lambda i: (0, 0)),               # b2
            pl.BlockSpec((1, H2),  lambda i: (0, 0)),               # w3 row
        ],
        out_specs=pl.BlockSpec((tile_b, 1), lambda i: (i, 0)),
        compiler_params=pltpu.CompilerParams(
            dimension_semantics=("parallel",),                       # v7x: 2 TCs
        ),
    )(kp["gamma"], kp["b3"], x, kp["wv"], kp["bv"],
      kp["w1f"], kp["b1f"], kp["w2f"], kp["b2f"], kp["w3row"])

    return out[:B]


def init_params(key, input_dim, h1=128, h2=64):
    """Raw PyTorch-style parameters (used by the pure-JAX reference)."""
    ks = jax.random.split(key, 16)

    def lin(k, fan_in, fan_out):
        bound = 1.0 / jnp.sqrt(fan_in)
        kw, kb = jax.random.split(k)
        w = jax.random.uniform(kw, (fan_in, fan_out), jnp.float32, -bound, bound)
        b = jax.random.uniform(kb, (1, fan_out), jnp.float32, -bound, bound)
        return w, b

    wq, bq = lin(ks[0], input_dim, input_dim)
    wk, bk = lin(ks[1], input_dim, input_dim)
    wv, bv = lin(ks[2], input_dim, input_dim)
    w1, b1 = lin(ks[3], input_dim, h1)
    w2, b2 = lin(ks[4], h1, h2)
    w3, b3 = lin(ks[5], h2, 1)

    return dict(
        wq=wq, bq=bq, wk=wk, bk=bk, wv=wv, bv=bv,
        gamma=jnp.zeros((1, 1), jnp.float32),   # nn.Parameter(torch.zeros(1))
        w1=w1, b1=b1,
        bn1_g=1.0 + 0.1 * jax.random.normal(ks[6], (1, h1), jnp.float32),
        bn1_b=0.1 * jax.random.normal(ks[7], (1, h1), jnp.float32),
        bn1_m=0.1 * jax.random.normal(ks[8], (1, h1), jnp.float32),
        bn1_v=1.0 + 0.1 * jax.random.uniform(ks[9], (1, h1), jnp.float32),
        w2=w2, b2=b2,
        bn2_g=1.0 + 0.1 * jax.random.normal(ks[10], (1, h2), jnp.float32),
        bn2_b=0.1 * jax.random.normal(ks[11], (1, h2), jnp.float32),
        bn2_m=0.1 * jax.random.normal(ks[12], (1, h2), jnp.float32),
        bn2_v=1.0 + 0.1 * jax.random.uniform(ks[13], (1, h2), jnp.float32),
        w3=w3, b3=b3,
    )


def prepare_params(p):
    """One-time host transform: fold eval-mode BN into fc1/fc2, pack scalars."""
    s1 = p["bn1_g"] * jax.lax.rsqrt(p["bn1_v"] + BN_EPS)        # (1, H1)
    s2 = p["bn2_g"] * jax.lax.rsqrt(p["bn2_v"] + BN_EPS)        # (1, H2)
    return dict(
        gamma=p["gamma"].reshape(1),                            # SMEM scalar
        wv=p["wv"], bv=p["bv"],
        w1f=p["w1"] * s1,
        b1f=(p["b1"] - p["bn1_m"]) * s1 + p["bn1_b"],
        w2f=p["w2"] * s2,
        b2f=(p["b2"] - p["bn2_m"]) * s2 + p["bn2_b"],
        w3row=p["w3"].T,                                        # (1, H2)
        b3=p["b3"].reshape(1),                                  # SMEM scalar
    )


def reference_forward(x, p):
    """Pure-JAX reference mirroring the PyTorch forward (eval mode), unfused."""
    q = x @ p["wq"] + p["bq"]
    k = x @ p["wk"] + p["bk"]
    v = x @ p["wv"] + p["bv"]
    energy = jnp.sum(q * k, axis=-1, keepdims=True)
    attn = jax.nn.softmax(energy[:, None, :], axis=2)[:, 0, :]  # (B,1) of ones
    att = p["gamma"][0, 0] * (attn * v) + x
    h1 = att @ p["w1"] + p["b1"]
    h1 = (h1 - p["bn1_m"]) / jnp.sqrt(p["bn1_v"] + BN_EPS) * p["bn1_g"] + p["bn1_b"]
    h1 = jax.nn.relu(h1)
    h2 = h1 @ p["w2"] + p["b2"]
    h2 = (h2 - p["bn2_m"]) / jnp.sqrt(p["bn2_v"] + BN_EPS) * p["bn2_g"] + p["bn2_b"]
    h2 = jax.nn.relu(h2)
    return jax.nn.sigmoid(h2 @ p["w3"] + p["b3"])


if __name__ == "__main__":
    key = jax.random.PRNGKey(0)
    k_x, k_p = jax.random.split(key)

    batch, input_dim = 8, 32
    x = jax.random.uniform(k_x, (batch, input_dim), jnp.float32)  # MinMax-scaled-like
    params = init_params(k_p, input_dim)
    kparams = prepare_params(params)

    out = attention_nn_forward(x, kparams)
    out = jax.block_until_ready(out)
    ref = reference_forward(x, params)
    assert out.shape == (batch, 1)
    assert jnp.allclose(out, ref, atol=1e-5, rtol=1e-5), (out, ref)

    # Exercise the batch-padding path (B not a multiple of the tile).
    batch2 = 13
    x2 = jax.random.uniform(jax.random.PRNGKey(1), (batch2, input_dim), jnp.float32)
    out2 = jax.block_until_ready(attention_nn_forward(x2, kparams))
    ref2 = reference_forward(x2, params)
    assert out2.shape == (batch2, 1)
    assert jnp.allclose(out2, ref2, atol=1e-5, rtol=1e-5), (out2, ref2)

    print("KERNEL_OK")
</pallas_src>

<mosaic_0001>
module attributes {stable_mosaic.version = 11 : i64} {
  func.func @attention_nn_kernel(%arg0: i32, %arg1: memref<1xf32, #tpu.memory_space<smem>>, %arg2: memref<1xf32, #tpu.memory_space<smem>>, %arg3: memref<8x32xf32, #tpu.memory_space<vmem>>, %arg4: memref<32x32xf32, #tpu.memory_space<vmem>>, %arg5: memref<1x32xf32, #tpu.memory_space<vmem>>, %arg6: memref<32x128xf32, #tpu.memory_space<vmem>>, %arg7: memref<1x128xf32, #tpu.memory_space<vmem>>, %arg8: memref<128x64xf32, #tpu.memory_space<vmem>>, %arg9: memref<1x64xf32, #tpu.memory_space<vmem>>, %arg10: memref<1x64xf32, #tpu.memory_space<vmem>>, %arg11: memref<8x1xf32, #tpu.memory_space<vmem>>) attributes {dimension_semantics = [#tpu.dimension_semantics<parallel>], iteration_bounds = array<i64: 1>, scalar_prefetch = 0 : i64, scratch_operands = 0 : i64, tpu.core_type = #tpu.core_type<tc>, window_params = [{transform_indices = @transform_0, window_bounds = array<i64: 1>}, {transform_indices = @transform_1, window_bounds = array<i64: 1>}, {transform_indices = @transform_2, window_bounds = array<i64: 8, 32>}, {pipeline_mode = #tpu.pipeline_mode<synchronous>, transform_indices = @transform_3, window_bounds = array<i64: 32, 32>}, {pipeline_mode = #tpu.pipeline_mode<synchronous>, transform_indices = @transform_4, window_bounds = array<i64: 1, 32>}, {pipeline_mode = #tpu.pipeline_mode<synchronous>, transform_indices = @transform_5, window_bounds = array<i64: 32, 128>}, {pipeline_mode = #tpu.pipeline_mode<synchronous>, transform_indices = @transform_6, window_bounds = array<i64: 1, 128>}, {pipeline_mode = #tpu.pipeline_mode<synchronous>, transform_indices = @transform_7, window_bounds = array<i64: 128, 64>}, {pipeline_mode = #tpu.pipeline_mode<synchronous>, transform_indices = @transform_8, window_bounds = array<i64: 1, 64>}, {pipeline_mode = #tpu.pipeline_mode<synchronous>, transform_indices = @transform_9, window_bounds = array<i64: 1, 64>}, {transform_indices = @transform_10, window_bounds = array<i64: 8, 1>}]} {
    %c0 = arith.constant 0 : index
    %c0_0 = arith.constant 0 : index
    %0 = vector.load %arg3[%c0, %c0_0] : memref<8x32xf32, #tpu.memory_space<vmem>>, vector<8x32xf32>
    %c0_1 = arith.constant 0 : index
    %c0_2 = arith.constant 0 : index
    %1 = vector.load %arg4[%c0_1, %c0_2] : memref<32x32xf32, #tpu.memory_space<vmem>>, vector<32x32xf32>
    %cst = arith.constant dense<0.000000e+00> : vector<8x32xf32>
    %2 = tpu.matmul %0, %1, %cst {dimension_numbers = #tpu.dot_dimension_numbers<[1], [0], [0], [1], [0, 0, 1, 1], [], []>} : vector<8x32xf32>, vector<32x32xf32>, vector<8x32xf32> -> vector<8x32xf32>
    %c0_3 = arith.constant 0 : index
    %c0_4 = arith.constant 0 : index
    %3 = vector.load %arg5[%c0_3, %c0_4] : memref<1x32xf32, #tpu.memory_space<vmem>>, vector<1x32xf32>
    %4 = vector.broadcast %3 : vector<1x32xf32> to vector<8x32xf32>
    %5 = arith.addf %2, %4 : vector<8x32xf32>
    %c0_5 = arith.constant 0 : index
    %6 = memref.load %arg1[%c0_5] : memref<1xf32, #tpu.memory_space<smem>>
    %7 = vector.broadcast %6 : f32 to vector<8x32xf32>
    %8 = arith.mulf %7, %5 : vector<8x32xf32>
    %9 = arith.addf %8, %0 : vector<8x32xf32>
    %c0_6 = arith.constant 0 : index
    %c0_7 = arith.constant 0 : index
    %10 = vector.load %arg6[%c0_6, %c0_7] : memref<32x128xf32, #tpu.memory_space<vmem>>, vector<32x128xf32>
    %cst_8 = arith.constant dense<0.000000e+00> : vector<8x128xf32>
    %11 = tpu.matmul %9, %10, %cst_8 {dimension_numbers = #tpu.dot_dimension_numbers<[1], [0], [0], [1], [0, 0, 1, 1], [], []>} : vector<8x32xf32>, vector<32x128xf32>, vector<8x128xf32> -> vector<8x128xf32>
    %c0_9 = arith.constant 0 : index
    %c0_10 = arith.constant 0 : index
    %12 = vector.load %arg7[%c0_9, %c0_10] : memref<1x128xf32, #tpu.memory_space<vmem>>, vector<1x128xf32>
    %13 = vector.broadcast %12 : vector<1x128xf32> to vector<8x128xf32>
    %14 = arith.addf %11, %13 : vector<8x128xf32>
    %cst_11 = arith.constant 0.000000e+00 : f32
    %15 = vector.broadcast %cst_11 : f32 to vector<8x128xf32>
    %16 = arith.maximumf %14, %15 : vector<8x128xf32>
    %c0_12 = arith.constant 0 : index
    %c0_13 = arith.constant 0 : index
    %17 = vector.load %arg8[%c0_12, %c0_13] : memref<128x64xf32, #tpu.memory_space<vmem>>, vector<128x64xf32>
    %cst_14 = arith.constant dense<0.000000e+00> : vector<8x64xf32>
    %18 = tpu.matmul %16, %17, %cst_14 {dimension_numbers = #tpu.dot_dimension_numbers<[1], [0], [0], [1], [0, 0, 1, 1], [], []>} : vector<8x128xf32>, vector<128x64xf32>, vector<8x64xf32> -> vector<8x64xf32>
    %c0_15 = arith.constant 0 : index
    %c0_16 = arith.constant 0 : index
    %19 = vector.load %arg9[%c0_15, %c0_16] : memref<1x64xf32, #tpu.memory_space<vmem>>, vector<1x64xf32>
    %20 = vector.broadcast %19 : vector<1x64xf32> to vector<8x64xf32>
    %21 = arith.addf %18, %20 : vector<8x64xf32>
    %cst_17 = arith.constant 0.000000e+00 : f32
    %22 = vector.broadcast %cst_17 : f32 to vector<8x64xf32>
    %23 = arith.maximumf %21, %22 : vector<8x64xf32>
    %c0_18 = arith.constant 0 : index
    %c0_19 = arith.constant 0 : index
    %24 = vector.load %arg10[%c0_18, %c0_19] : memref<1x64xf32, #tpu.memory_space<vmem>>, vector<1x64xf32>
    %25 = vector.broadcast %24 : vector<1x64xf32> to vector<8x64xf32>
    %26 = arith.mulf %23, %25 : vector<8x64xf32>
    %cst_20 = arith.constant dense<0.000000e+00> : vector<8xf32>
    %27 = vector.multi_reduction <add>, %26, %cst_20 [1] : vector<8x64xf32> to vector<8xf32>
    %28 = vector.shape_cast %27 : vector<8xf32> to vector<8x1xf32>
    %c0_21 = arith.constant 0 : index
    %29 = memref.load %arg2[%c0_21] : memref<1xf32, #tpu.memory_space<smem>>
    %30 = vector.broadcast %29 : f32 to vector<8x1xf32>
    %31 = arith.addf %28, %30 : vector<8x1xf32>
    %32 = arith.negf %31 : vector<8x1xf32>
    %33 = math.exp %32 : vector<8x1xf32>
    %cst_22 = arith.constant 1.000000e+00 : f32
    %34 = vector.broadcast %cst_22 : f32 to vector<8x1xf32>
    %35 = arith.addf %34, %33 : vector<8x1xf32>
    %36 = arith.divf %34, %35 : vector<8x1xf32>
    %c0_23 = arith.constant 0 : index
    %c0_24 = arith.constant 0 : index
    %37 = vector.load %arg11[%c0_23, %c0_24] : memref<8x1xf32, #tpu.memory_space<vmem>>, vector<8x1xf32>
    tpu.vector_store %arg11[%c0_23, %c0_24], %36 {strides = array<i32>} : memref<8x1xf32, #tpu.memory_space<vmem>>, vector<8x1xf32>,
    return
  }
  func.func @transform_0(%arg0: i32) -> i32 {
    %c0_i32 = arith.constant 0 : i32
    %c0_i32_0 = arith.constant 0 : i32
    return %c0_i32 : i32
  }
  func.func @transform_1(%arg0: i32) -> i32 {
    %c0_i32 = arith.constant 0 : i32
    %c0_i32_0 = arith.constant 0 : i32
    return %c0_i32 : i32
  }
  func.func @transform_2(%arg0: i32) -> (i32, i32) {
    %c0_i32 = arith.constant 0 : i32
    %c0_i32_0 = arith.constant 0 : i32
    return %arg0, %c0_i32 : i32, i32
  }
  func.func @transform_3(%arg0: i32) -> (i32, i32) {
    %c0_i32 = arith.constant 0 : i32
    %c0_i32_0 = arith.constant 0 : i32
    %c0_i32_1 = arith.constant 0 : i32
    return %c0_i32, %c0_i32_0 : i32, i32
  }
  func.func @transform_4(%arg0: i32) -> (i32, i32) {
    %c0_i32 = arith.constant 0 : i32
    %c0_i32_0 = arith.constant 0 : i32
    %c0_i32_1 = arith.constant 0 : i32
    return %c0_i32, %c0_i32_0 : i32, i32
  }
  func.func @transform_5(%arg0: i32) -> (i32, i32) {
    %c0_i32 = arith.constant 0 : i32
    %c0_i32_0 = arith.constant 0 : i32
    %c0_i32_1 = arith.constant 0 : i32
    return %c0_i32, %c0_i32_0 : i32, i32
  }
  func.func @transform_6(%arg0: i32) -> (i32, i32) {
    %c0_i32 = arith.constant 0 : i32
    %c0_i32_0 = arith.constant 0 : i32
    %c0_i32_1 = arith.constant 0 : i32
    return %c0_i32, %c0_i32_0 : i32, i32
  }
  func.func @transform_7(%arg0: i32) -> (i32, i32) {
    %c0_i32 = arith.constant 0 : i32
    %c0_i32_0 = arith.constant 0 : i32
    %c0_i32_1 = arith.constant 0 : i32
    return %c0_i32, %c0_i32_0 : i32, i32
  }
  func.func @transform_8(%arg0: i32) -> (i32, i32) {
    %c0_i32 = arith.constant 0 : i32
    %c0_i32_0 = arith.constant 0 : i32
    %c0_i32_1 = arith.constant 0 : i32
    return %c0_i32, %c0_i32_0 : i32, i32
  }
  func.func @transform_9(%arg0: i32) -> (i32, i32) {
    %c0_i32 = arith.constant 0 : i32
    %c0_i32_0 = arith.constant 0 : i32
    %c0_i32_1 = arith.constant 0 : i32
    return %c0_i32, %c0_i32_0 : i32, i32
  }
  func.func @transform_10(%arg0: i32) -> (i32, i32) {
    %c0_i32 = arith.constant 0 : i32
    %c0_i32_0 = arith.constant 0 : i32
    return %arg0, %c0_i32 : i32, i32
  }
}

</mosaic_0001>

<bundles_post_ra>
// kernel: tpu_custom_call.1
= control target key start
LH: loop header
LB: loop body
LE: loop exit
PB: predicated region body
PF: predicated region fallthrough
CT: control target
= control target key end

     0   :  { %v467_v0 = vmov 0.0|0.0   ;;  %vm468_vm0 = vmmov 0   ;;  %v469_v4 = vmov 0.0   ;;  %vm49_vm1 = vcmask 261120   ;;  %s638_s3 = inlined_call_operand.vmem [shape: f32[32,32], index: 3, kind: input, shape index: {}]   ;;  %s639_s2 = inlined_call_operand.vmem [shape: f32[8,32], index: 2, kind: input, shape index: {}]   ;;  %s640_s5 = inlined_call_operand.vmem [shape: f32[32,128], index: 5, kind: input, shape index: {}]   ;;  %s641_s7 = inlined_call_operand.vmem [shape: f32[128,64], index: 7, kind: input, shape index: {}]   ;;  %s642_s4 = inlined_call_operand.vmem [shape: f32[1,32], index: 4, kind: input, shape index: {}]   ;;  %s643_s0 = inlined_call_operand.<no memory space> [shape: f32[1], index: 0, kind: input, shape index: {}]   ;;  %s644_s6 = inlined_call_operand.vmem [shape: f32[1,128], index: 6, kind: input, shape index: {}]   ;;  %s645_s8 = inlined_call_operand.vmem [shape: f32[1,64], index: 8, kind: input, shape index: {}]   ;;  %s646_s9 = inlined_call_operand.vmem [shape: f32[1,64], index: 9, kind: input, shape index: {}]   ;;  %s647_s1 = inlined_call_operand.<no memory space> [shape: f32[1], index: 1, kind: input, shape index: {}]   ;;  %s648_s10 = inlined_call_operand.vmem [shape: f32[8,1], index: 10, kind: output, shape index: {}]  }
   0x1   :  { %424 = vmatprep.subr.bf16.mxu1 %v467_v0  ;;  %v38_v1 = vld [vmem:[%s638_s3] sm:$0xff]  ;;  %v39_v2 = vld [vmem:[%s638_s3 + $0x8] sm:$0xff]  ;;  %v40_v3 = vld [vmem:[%s638_s3 + $0x10] sm:$0xff]  ;;  %375 = vmatprep.mubr.msk.f32.mxu1 %vm468_vm0, %v469_v4  ;;  %v124_v38 = vstv %s643_s0  ;;  %vm314_vm2 = vcmask 523264   ;;  %vm327_vm3 = vcmask 7168  }
   0x2   :  { %v425_v5 = vpack.c.bf16 %v39_v2, %v38_v1  ;;  %v41_v6 = vld [vmem:[%s638_s3 + $0x18] sm:$0xff]  ;;  %436 = vmatprep.subr.bf16.mxu0 %v467_v0  ;;  %421 = vmatprep.mubr.msk.f32.mxu0 %vm468_vm0, %v469_v4  ;;  %v37_v8 = vld [vmem:[%s639_s2] sm:$0xff]  ;;  %v128_v10 = vld [vmem:[%s640_s5 + $0x8] sm:$0xff]  ;;  %v319_v59 = vstv %s647_s1 }
   0x3   :  { %v428_v7 = vpack.c.bf16 %v41_v6, %v40_v3  ;;  %v127_v9 = vld [vmem:[%s640_s5] sm:$0xff]  ;;  %v129_v12 = vld [vmem:[%s640_s5 + $0x10] sm:$0xff]  ;;  %v130_v13 = vld [vmem:[%s640_s5 + $0x18] sm:$0xff] }
   0x4   :  { %426 = vmatpush3.bf16.msra.mxu1 %v425_v5  ;;  %v431_v11 = vpack.c.bf16 %v128_v10, %v127_v9  ;;  %v434_v14 = vpack.c.bf16 %v130_v13, %v129_v12  ;;  %v212_v15 = vld [vmem:[%s641_s7] sm:$0xff]  ;;  %v213_v16 = vld [vmem:[%s641_s7 + $0x8] sm:$0xff]  ;;  %v214_v17 = vld [vmem:[%s641_s7 + $0x10] sm:$0xff] }
   0x5   :  { %427 = vmatprep.subr.bf16.mxu1 %v467_v0  ;;  %v437_v18 = vpack.c.bf16 %v213_v16, %v212_v15  ;;  %v215_v19 = vld [vmem:[%s641_s7 + $0x18] sm:$0xff]  ;;  %v216_v21 = vld [vmem:[%s641_s7 + $0x20] sm:$0xff]  ;;  %v217_v22 = vld [vmem:[%s641_s7 + $0x28] sm:$0xff] }
   0x6   :  { %v440_v20 = vpack.c.bf16 %v215_v19, %v214_v17  ;;  %v443_v23 = vpack.c.bf16 %v217_v22, %v216_v21  ;;  %v218_v24 = vld [vmem:[%s641_s7 + $0x30] sm:$0xff]  ;;  %v219_v25 = vld [vmem:[%s641_s7 + $0x38] sm:$0xff]  ;;  %v220_v27 = vld [vmem:[%s641_s7 + $0x40] sm:$0xff] }
   0x7   :  { %438 = vmatpush3.bf16.msra.mxu0 %v437_v18  ;;  %v446_v26 = vpack.c.bf16 %v219_v25, %v218_v24  ;;  %v221_v28 = vld [vmem:[%s641_s7 + $0x48] sm:$0xff]  ;;  %v222_v30 = vld [vmem:[%s641_s7 + $0x50] sm:$0xff]  ;;  %v223_v31 = vld [vmem:[%s641_s7 + $0x58] sm:$0xff] }
   0x8   :  { %429 = vmatpush3.bf16.msra.mxu1 %v428_v7  ;;  %439 = vmatprep.subr.bf16.mxu0 %v467_v0  ;;  %v449_v29 = vpack.c.bf16 %v221_v28, %v220_v27  ;;  %v452_v32 = vpack.c.bf16 %v223_v31, %v222_v30  ;;  %v224_v33 = vld [vmem:[%s641_s7 + $0x60] sm:$0xff]  ;;  %v225_v34 = vld [vmem:[%s641_s7 + $0x68] sm:$0xff]  ;;  %v226_v43 = vld [vmem:[%s641_s7 + $0x70] sm:$0xff] }
   0x9   :  { %430 = vmatprep.subr.bf16.mxu1 %v467_v0  ;;  %v455_v35 = vpack.c.bf16 %v225_v34, %v224_v33  ;;  %v333_v36 = vld [vmem:[%s642_s4] ss:$0 sm:$0xff]  ;;  %v227_v44 = vld [vmem:[%s641_s7 + $0x78] sm:$0xff] }
   0xa   :  { %v458_v45 = vpack.c.bf16 %v227_v44, %v226_v43  ;;  %v335_v46 = vld [vmem:[%s644_s6] ss:$0 sm:$0xff] }
   0xb   :  { %376 = vmatmul.mubr.msk.f32.vlgmr.msra.gmra.mrb[0].mxu1 %vm49_vm1, %v37_v8  ;;  %441 = vmatpush3.bf16.msra.mxu0 %v440_v20  ;;  %v337_v51 = vld [vmem:[%s645_s8] ss:$0 sm:$0xff] }
   0xc   :  { %386 = vmatprep.mubr.msk.f32.mxu1 %vm468_vm0, %v469_v4  ;;  %432 = vmatpush3.bf16.msra.mxu1 %v431_v11  ;;  %v338_v55 = vld [vmem:[%s646_s9] ss:$0 sm:$0xff] }
   0xd   :  { %433 = vmatprep.subr.bf16.mxu1 %v467_v0  ;;  %442 = vmatprep.subr.bf16.mxu0 %v467_v0 }
   0xf   :  { %444 = vmatpush3.bf16.msra.mxu0 %v443_v23 }
  0x10   :  { %435 = vmatpush3.bf16.msra.mxu1 %v434_v14  ;;  %445 = vmatprep.subr.bf16.mxu0 %v467_v0 }
  0x13   :  { %447 = vmatpush3.bf16.msra.mxu0 %v446_v26 }
  0x14   :  { %448 = vmatprep.subr.bf16.mxu0 %v467_v0 }
  0x17   :  { %450 = vmatpush3.bf16.msra.mxu0 %v449_v29 }
  0x18   :  { %451 = vmatprep.subr.bf16.mxu0 %v467_v0 }
  0x1b   :  { %453 = vmatpush3.bf16.msra.mxu0 %v452_v32 }
  0x1c   :  { %454 = vmatprep.subr.bf16.mxu0 %v467_v0 }
  0x1f   :  { %456 = vmatpush3.bf16.msra.mxu0 %v455_v35 }
  0x20   :  { %457 = vmatprep.subr.bf16.mxu0 %v467_v0 }
  0x23   :  { %459 = vmatpush3.bf16.msra.mxu0 %v458_v45 }
  0xde   :  { %v119_v37 = vpop.f32.mrb[0].mxu1 }
  0xdf   :  { %v120_v39 = vadd.f32 %v333_v36, %v119_v37  ;;  %v377_v40 = vpop.f32.mrb[1].mxu1 }
  0xe1   :  { %v125_v41 = vmul.f32 %v124_v38, %v120_v39 }
  0xe3   :  { %v126_v42 = vadd.f32 %v125_v41, %v37_v8 }
  0xe5   :  { %387 = vmatmul.mubr.msk.f32.vlgmr.msra.gmra.mrb[2].mxu1 %vm49_vm1, %v126_v42 }
 0x1b8   :  { %v207_v47 = vpop.f32.mrb[2].mxu1 }
 0x1b9   :  { %v208_v48 = vadd.f32 %v335_v46, %v207_v47  ;;  %v388_v49 = vpop.f32.mrb[3].mxu1 }
 0x1bb   :  { %v211_v50 = vmax.f32 %v208_v48, 0.0 }
 0x1bd   :  { %422 = vmatmul.mubr.f32.vlgmr.msra.gmra.mrb[0].mxu0 %v211_v50 }
 0x290   :  { %v301_v52 = vpop.f32.mrb[0].mxu0 }
 0x291   :  { %v302_v53 = vadd.f32 %v337_v51, %v301_v52  ;;  %v423_v54 = vpop.f32.mrb[1].mxu0 }
 0x293   :  { %v305_v56 = vmax.f32 %v302_v53, 0.0 }
 0x295   :  { %v313_v57 = vmul.f32 %v338_v55, %v305_v56 }
 0x297   :  { %v315_v58 = vsel %vm314_vm2, %v313_v57, 0.0 }
 0x298   :  { %316 = vadd.xlane.f32.xlu0 %v315_v58 }
 0x325   :  { %v317_v60 = vpop.xlane.xlu0 %316 }
 0x326   :  { %v320_v61 = vadd.f32 %v319_v59, %v317_v60 }
 0x328   :  { %v339_v62 = vmul.f32 -1.442695, %v320_v61 }
 0x32a   :  { %463 = vpow2.f32 %v339_v62 }
 0x334   :  { %v464_v63 = vpop.eup %463 }
 0x335   :  { %v324_v0 = vadd.f32 1.0, %v464_v63 }
 0x337   :  { %465 = vrcp.f32 %v324_v0 }
 0x341   :  { %v466_v1 = vpop.eup %465 }
 0x342   :  { %328 = vst.msk [vmem:[%s648_s10] sm:$0xff] %vm327_vm3, %v466_v1 }

</bundles_post_ra>
